<compile_context>
chip_gen: v7x
topology: tpu7x:2x2x1
jax: 0.10.0
libtpu: 0.0.40
codegen_flags: <defaults>
</compile_context>

<pallas_src>
import jax
import jax.numpy as jnp
from jax import lax
from jax.experimental import pallas as pl
from jax.experimental.pallas import tpu as pltpu


def dcd_kernel(x_ref, w1_ref, b1_ref, w2_ref, b2_ref, w3t_ref, b3t_ref, o_ref):
    # x_ref: (TB, F), w1: (F, H), b1: (1, H), w2: (H, H), b2: (1, H),
    # w3t: (C, H), b3t: (C, 1), o_ref: (C, TB)   -- batch on the lane axis.
    x = x_ref[...]

    # fc1 + ReLU
    h1 = jnp.dot(x, w1_ref[...], preferred_element_type=jnp.float32) + b1_ref[...]
    h1 = jnp.maximum(h1, 0.0)

    # fc2 (no activation)
    h2 = jnp.dot(h1, w2_ref[...], preferred_element_type=jnp.float32) + b2_ref[...]

    # fc3 computed transposed: (C, H) x (TB, H) contracted over H -> (C, TB).
    # The implicit h2 transpose goes to the XLU; the softmax below then runs
    # lane-dense (classes on the sublane axis, batch on the lane axis).
    logits_t = lax.dot_general(
        w3t_ref[...], h2,
        dimension_numbers=(((1,), (1,)), ((), ())),
        preferred_element_type=jnp.float32,
    ) + b3t_ref[...]

    # Numerically stable softmax over the class (sublane) axis. Exact divide so
    # probabilities sum to 1 to f32 precision.
    m = jnp.max(logits_t, axis=0, keepdims=True)          # (1, TB)
    e = jnp.exp(logits_t - m)                             # (C, TB)
    denom = jnp.sum(e, axis=0, keepdims=True)             # (1, TB)
    o_ref[...] = (e / denom).astype(o_ref.dtype)


def dcd_forward(x, w1, b1, w2, b2, w3, b3, *, tb_max=2048):
    """x: (B, F) f32; w*: (in, out) f32; b*: (out,) f32 -> (B, 4) f32 probs."""
    B, F_in = x.shape
    H = w1.shape[1]
    C = w3.shape[1]
    LANE = 128  # batch lives on the lane axis of the output -> tb % 128 == 0

    # Balanced tiling: enough tiles to respect tb_max, and >=2 tiles whenever
    # B is large enough that the extra padding is negligible (gives v7x's
    # second TensorCore work via the "parallel" batch axis).
    n_tiles = pl.cdiv(B, tb_max)
    if B >= 2 * LANE:
        n_tiles = max(n_tiles, 2)
    tb = ((pl.cdiv(B, n_tiles) + LANE - 1) // LANE) * LANE
    Bp = n_tiles * tb
    if Bp != B:
        x = jnp.pad(x, ((0, Bp - B), (0, 0)))

    out_t = pl.pallas_call(
        dcd_kernel,
        out_shape=jax.ShapeDtypeStruct((C, Bp), jnp.float32),
        grid=(Bp // tb,),
        in_specs=[
            pl.BlockSpec((tb, F_in), lambda i: (i, 0)),   # x: streamed per tile
            pl.BlockSpec((F_in, H), lambda i: (0, 0)),    # w1: resident
            pl.BlockSpec((1, H), lambda i: (0, 0)),       # b1: resident
            pl.BlockSpec((H, H), lambda i: (0, 0)),       # w2: resident
            pl.BlockSpec((1, H), lambda i: (0, 0)),       # b2: resident
            pl.BlockSpec((C, H), lambda i: (0, 0)),       # w3^T: resident
            pl.BlockSpec((C, 1), lambda i: (0, 0)),       # b3 as column: resident
        ],
        out_specs=pl.BlockSpec((C, tb), lambda i: (0, i)),  # lane-dense output
        compiler_params=pltpu.CompilerParams(
            dimension_semantics=("parallel",),  # megacore sharding on v7x
        ),
    )(x, w1, b1.reshape(1, H), w2, b2.reshape(1, H),
      w3.T, b3.reshape(C, 1))

    # (C, Bp) -> (B, C); tiny wrapper-side transpose (16*B bytes).
    return out_t[:, :B].T


if __name__ == "__main__":
    INPUT_FEATURES = 128
    H_FEATURES = 64
    NUM_CLASSES = 4
    BATCH = 8

    key = jax.random.PRNGKey(0)
    kx, k1w, k1b, k2w, k2b, k3w, k3b = jax.random.split(key, 7)

    # PyTorch-Linear-like uniform init, weights stored as (in, out)
    def linear_params(kw, kb, fan_in, fan_out):
        bound = 1.0 / jnp.sqrt(fan_in)
        w = jax.random.uniform(kw, (fan_in, fan_out), dtype=jnp.float32,
                               minval=-bound, maxval=bound)
        b = jax.random.uniform(kb, (fan_out,), dtype=jnp.float32,
                               minval=-bound, maxval=bound)
        return w, b

    w1, b1 = linear_params(k1w, k1b, INPUT_FEATURES, H_FEATURES)
    w2, b2 = linear_params(k2w, k2b, H_FEATURES, H_FEATURES)
    w3, b3 = linear_params(k3w, k3b, H_FEATURES, NUM_CLASSES)
    x = jax.random.normal(kx, (BATCH, INPUT_FEATURES), dtype=jnp.float32)

    out = dcd_forward(x, w1, b1, w2, b2, w3, b3)
    out = jax.block_until_ready(out)

    # Reference (plain JAX).
    h1 = jnp.maximum(x @ w1 + b1, 0.0)
    h2 = h1 @ w2 + b2
    ref = jax.nn.softmax(h2 @ w3 + b3, axis=1)

    assert out.shape == (BATCH, NUM_CLASSES)
    assert jnp.allclose(out, ref, atol=1e-3, rtol=1e-3), (
        f"max abs err = {jnp.max(jnp.abs(out - ref))}")
    assert jnp.allclose(jnp.sum(out, axis=1), 1.0, atol=1e-5)

    print("KERNEL_OK")
</pallas_src>

<mosaic_0001>
module attributes {stable_mosaic.version = 11 : i64} {
  func.func @dcd_kernel(%arg0: i32, %arg1: memref<128x128xf32, #tpu.memory_space<vmem>>, %arg2: memref<128x64xf32, #tpu.memory_space<vmem>>, %arg3: memref<1x64xf32, #tpu.memory_space<vmem>>, %arg4: memref<64x64xf32, #tpu.memory_space<vmem>>, %arg5: memref<1x64xf32, #tpu.memory_space<vmem>>, %arg6: memref<4x64xf32, #tpu.memory_space<vmem>>, %arg7: memref<4x1xf32, #tpu.memory_space<vmem>>, %arg8: memref<4x128xf32, #tpu.memory_space<vmem>>) attributes {dimension_semantics = [#tpu.dimension_semantics<parallel>], iteration_bounds = array<i64: 1>, scalar_prefetch = 0 : i64, scratch_operands = 0 : i64, tpu.core_type = #tpu.core_type<tc>, window_params = [{transform_indices = @transform_0, window_bounds = array<i64: 128, 128>}, {pipeline_mode = #tpu.pipeline_mode<synchronous>, transform_indices = @transform_1, window_bounds = array<i64: 128, 64>}, {pipeline_mode = #tpu.pipeline_mode<synchronous>, transform_indices = @transform_2, window_bounds = array<i64: 1, 64>}, {pipeline_mode = #tpu.pipeline_mode<synchronous>, transform_indices = @transform_3, window_bounds = array<i64: 64, 64>}, {pipeline_mode = #tpu.pipeline_mode<synchronous>, transform_indices = @transform_4, window_bounds = array<i64: 1, 64>}, {pipeline_mode = #tpu.pipeline_mode<synchronous>, transform_indices = @transform_5, window_bounds = array<i64: 4, 64>}, {pipeline_mode = #tpu.pipeline_mode<synchronous>, transform_indices = @transform_6, window_bounds = array<i64: 4, 1>}, {transform_indices = @transform_7, window_bounds = array<i64: 4, 128>}]} {
    %c0 = arith.constant 0 : index
    %c0_0 = arith.constant 0 : index
    %0 = vector.load %arg1[%c0, %c0_0] : memref<128x128xf32, #tpu.memory_space<vmem>>, vector<128x128xf32>
    %c0_1 = arith.constant 0 : index
    %c0_2 = arith.constant 0 : index
    %1 = vector.load %arg2[%c0_1, %c0_2] : memref<128x64xf32, #tpu.memory_space<vmem>>, vector<128x64xf32>
    %cst = arith.constant dense<0.000000e+00> : vector<128x64xf32>
    %2 = tpu.matmul %0, %1, %cst {dimension_numbers = #tpu.dot_dimension_numbers<[1], [0], [0], [1], [0, 0, 1, 1], [], []>} : vector<128x128xf32>, vector<128x64xf32>, vector<128x64xf32> -> vector<128x64xf32>
    %c0_3 = arith.constant 0 : index
    %c0_4 = arith.constant 0 : index
    %3 = vector.load %arg3[%c0_3, %c0_4] : memref<1x64xf32, #tpu.memory_space<vmem>>, vector<1x64xf32>
    %4 = vector.broadcast %3 : vector<1x64xf32> to vector<128x64xf32>
    %5 = arith.addf %2, %4 : vector<128x64xf32>
    %cst_5 = arith.constant 0.000000e+00 : f32
    %6 = vector.broadcast %cst_5 : f32 to vector<128x64xf32>
    %7 = arith.maximumf %5, %6 : vector<128x64xf32>
    %c0_6 = arith.constant 0 : index
    %c0_7 = arith.constant 0 : index
    %8 = vector.load %arg4[%c0_6, %c0_7] : memref<64x64xf32, #tpu.memory_space<vmem>>, vector<64x64xf32>
    %cst_8 = arith.constant dense<0.000000e+00> : vector<128x64xf32>
    %9 = tpu.matmul %7, %8, %cst_8 {dimension_numbers = #tpu.dot_dimension_numbers<[1], [0], [0], [1], [0, 0, 1, 1], [], []>} : vector<128x64xf32>, vector<64x64xf32>, vector<128x64xf32> -> vector<128x64xf32>
    %c0_9 = arith.constant 0 : index
    %c0_10 = arith.constant 0 : index
    %10 = vector.load %arg5[%c0_9, %c0_10] : memref<1x64xf32, #tpu.memory_space<vmem>>, vector<1x64xf32>
    %11 = vector.broadcast %10 : vector<1x64xf32> to vector<128x64xf32>
    %12 = arith.addf %9, %11 : vector<128x64xf32>
    %c0_11 = arith.constant 0 : index
    %c0_12 = arith.constant 0 : index
    %13 = vector.load %arg6[%c0_11, %c0_12] : memref<4x64xf32, #tpu.memory_space<vmem>>, vector<4x64xf32>
    %cst_13 = arith.constant dense<0.000000e+00> : vector<4x128xf32>
    %14 = tpu.matmul %13, %12, %cst_13 {dimension_numbers = #tpu.dot_dimension_numbers<[1], [1], [0], [0], [0, 0, 1, 0], [], []>} : vector<4x64xf32>, vector<128x64xf32>, vector<4x128xf32> -> vector<4x128xf32>
    %c0_14 = arith.constant 0 : index
    %c0_15 = arith.constant 0 : index
    %15 = vector.load %arg7[%c0_14, %c0_15] : memref<4x1xf32, #tpu.memory_space<vmem>>, vector<4x1xf32>
    %16 = vector.broadcast %15 : vector<4x1xf32> to vector<4x128xf32>
    %17 = arith.addf %14, %16 : vector<4x128xf32>
    %cst_16 = arith.constant dense<0xFF800000> : vector<128xf32>
    %18 = vector.multi_reduction <maximumf>, %17, %cst_16 [0] : vector<4x128xf32> to vector<128xf32>
    %19 = vector.shape_cast %18 : vector<128xf32> to vector<1x128xf32>
    %20 = vector.broadcast %19 : vector<1x128xf32> to vector<4x128xf32>
    %21 = arith.subf %17, %20 : vector<4x128xf32>
    %22 = math.exp %21 : vector<4x128xf32>
    %cst_17 = arith.constant dense<0.000000e+00> : vector<128xf32>
    %23 = vector.multi_reduction <add>, %22, %cst_17 [0] : vector<4x128xf32> to vector<128xf32>
    %24 = vector.shape_cast %23 : vector<128xf32> to vector<1x128xf32>
    %25 = vector.broadcast %24 : vector<1x128xf32> to vector<4x128xf32>
    %26 = arith.divf %22, %25 : vector<4x128xf32>
    %c0_18 = arith.constant 0 : index
    %c0_19 = arith.constant 0 : index
    %27 = vector.load %arg8[%c0_18, %c0_19] : memref<4x128xf32, #tpu.memory_space<vmem>>, vector<4x128xf32>
    tpu.vector_store %arg8[%c0_18, %c0_19], %26 {strides = array<i32>} : memref<4x128xf32, #tpu.memory_space<vmem>>, vector<4x128xf32>,
    return
  }
  func.func @transform_0(%arg0: i32) -> (i32, i32) {
    %c0_i32 = arith.constant 0 : i32
    %c0_i32_0 = arith.constant 0 : i32
    return %arg0, %c0_i32 : i32, i32
  }
  func.func @transform_1(%arg0: i32) -> (i32, i32) {
    %c0_i32 = arith.constant 0 : i32
    %c0_i32_0 = arith.constant 0 : i32
    %c0_i32_1 = arith.constant 0 : i32
    return %c0_i32, %c0_i32_0 : i32, i32
  }
  func.func @transform_2(%arg0: i32) -> (i32, i32) {
    %c0_i32 = arith.constant 0 : i32
    %c0_i32_0 = arith.constant 0 : i32
    %c0_i32_1 = arith.constant 0 : i32
    return %c0_i32, %c0_i32_0 : i32, i32
  }
  func.func @transform_3(%arg0: i32) -> (i32, i32) {
    %c0_i32 = arith.constant 0 : i32
    %c0_i32_0 = arith.constant 0 : i32
    %c0_i32_1 = arith.constant 0 : i32
    return %c0_i32, %c0_i32_0 : i32, i32
  }
  func.func @transform_4(%arg0: i32) -> (i32, i32) {
    %c0_i32 = arith.constant 0 : i32
    %c0_i32_0 = arith.constant 0 : i32
    %c0_i32_1 = arith.constant 0 : i32
    return %c0_i32, %c0_i32_0 : i32, i32
  }
  func.func @transform_5(%arg0: i32) -> (i32, i32) {
    %c0_i32 = arith.constant 0 : i32
    %c0_i32_0 = arith.constant 0 : i32
    %c0_i32_1 = arith.constant 0 : i32
    return %c0_i32, %c0_i32_0 : i32, i32
  }
  func.func @transform_6(%arg0: i32) -> (i32, i32) {
    %c0_i32 = arith.constant 0 : i32
    %c0_i32_0 = arith.constant 0 : i32
    %c0_i32_1 = arith.constant 0 : i32
    return %c0_i32, %c0_i32_0 : i32, i32
  }
  func.func @transform_7(%arg0: i32) -> (i32, i32) {
    %c0_i32 = arith.constant 0 : i32
    %c0_i32_0 = arith.constant 0 : i32
    return %c0_i32, %arg0 : i32, i32
  }
}

</mosaic_0001>

<bundles_post_ra>
// kernel: tpu_custom_call.1
= control target key start
LH: loop header
LB: loop body
LE: loop exit
PB: predicated region body
PF: predicated region fallthrough
CT: control target
= control target key end

     0   :  { %s1188_s0 = inlined_call_operand.vmem [shape: f32[128,128], index: 0, kind: input, shape index: {}]   ;;  %s1189_s1 = inlined_call_operand.vmem [shape: f32[128,64], index: 1, kind: input, shape index: {}]   ;;  %s1190_s2 = inlined_call_operand.vmem [shape: f32[1,64], index: 2, kind: input, shape index: {}]   ;;  %s1191_s3 = inlined_call_operand.vmem [shape: f32[64,64], index: 3, kind: input, shape index: {}]   ;;  %s1192_s4 = inlined_call_operand.vmem [shape: f32[1,64], index: 4, kind: input, shape index: {}]   ;;  %s1193_s5 = inlined_call_operand.vmem [shape: f32[4,64], index: 5, kind: input, shape index: {}]   ;;  %s1194_s6 = inlined_call_operand.vmem [shape: f32[4,1], index: 6, kind: input, shape index: {}]   ;;  %s1195_s7 = inlined_call_operand.hbm [shape: f32[4,128], index: 7, kind: output, shape index: {}]  }
   0x1   :  { %v43_v0 = vld [vmem:[%s1189_s1] sm:$0xff]  ;;  %v44_v1 = vld [vmem:[%s1189_s1 + $0x8] sm:$0xff]  ;;  %v45_v2 = vld [vmem:[%s1189_s1 + $0x10] sm:$0xff] }
   0x2   :  { %v838_v3 = vpack.c.bf16 %v44_v1, %v43_v0  ;;  %v46_v4 = vld [vmem:[%s1189_s1 + $0x18] sm:$0xff]  ;;  %v47_v6 = vld [vmem:[%s1189_s1 + $0x20] sm:$0xff]  ;;  %v48_v7 = vld [vmem:[%s1189_s1 + $0x28] sm:$0xff] }
   0x3   :  { %v842_v5 = vpack.c.bf16 %v46_v4, %v45_v2  ;;  %v846_v8 = vpack.c.bf16 %v48_v7, %v47_v6  ;;  %v27_v9 = vld [vmem:[%s1188_s0] sm:$0xff]  ;;  %v49_v10 = vld [vmem:[%s1189_s1 + $0x30] sm:$0xff]  ;;  %v50_v11 = vld [vmem:[%s1189_s1 + $0x38] sm:$0xff] }
   0x4   :  { %839 = vmatprep.subr.bf16.mxu0 %v838_v3  ;;  %739 = vmatprep.mubr.f32.mxu0 %v27_v9  ;;  %v850_v12 = vpack.c.bf16 %v50_v11, %v49_v10  ;;  %v51_v13 = vld [vmem:[%s1189_s1 + $0x40] sm:$0xff]  ;;  %v52_v14 = vld [vmem:[%s1189_s1 + $0x48] sm:$0xff]  ;;  %v229_v17 = vld [vmem:[%s1191_s3 + $0x10] sm:$0xff] }
   0x5   :  { %841 = vmatpush3.bf16.msra.mxu0 %v838_v3  ;;  %v227_v15 = vld [vmem:[%s1191_s3] sm:$0xff]  ;;  %v228_v16 = vld [vmem:[%s1191_s3 + $0x8] sm:$0xff]  ;;  %v230_v18 = vld [vmem:[%s1191_s3 + $0x18] sm:$0xff] }
   0x6   :  { %843 = vmatprep.subr.bf16.mxu0 %v842_v5  ;;  %v870_v19 = vpack.c.bf16 %v228_v16, %v227_v15  ;;  %v874_v20 = vpack.c.bf16 %v230_v18, %v229_v17 }
   0x9   :  { %845 = vmatpush3.bf16.msra.mxu0 %v842_v5 }
   0xa   :  { %847 = vmatprep.subr.bf16.mxu0 %v846_v8 }
   0xd   :  { %849 = vmatpush3.bf16.msra.mxu0 %v846_v8 }
   0xe   :  { %12 = vsyncpa [#allocation3], 0  ;;  %851 = vmatprep.subr.bf16.mxu0 %v850_v12  ;;  %v854_v21 = vpack.c.bf16 %v52_v14, %v51_v13  ;;  %v231_v22 = vld [vmem:[%s1191_s3 + $0x20] sm:$0xff]  ;;  %v232_v23 = vld [vmem:[%s1191_s3 + $0x28] sm:$0xff]  ;;  %871 = vmatprep.subr.bf16.mxu1 %v870_v19  ;;  %vm242_vm0 = vcmask 523264   ;;  %vm953_vm1 = vmmov 0  }
   0xf   :  { %v53_v24 = vld [vmem:[%s1189_s1 + $0x50] sm:$0xff]  ;;  %v54_v25 = vld [vmem:[%s1189_s1 + $0x58] sm:$0xff]  ;;  %873 = vmatpush3.bf16.msra.mxu1 %v870_v19  ;;  %v878_v26 = vpack.c.bf16 %v232_v23, %v231_v22  ;;  %v55_v28 = vld [vmem:[%s1189_s1 + $0x60] sm:$0xff]  ;;  %vm564_vm3 = vcmask 1043456  }
  0x10   :  { %875 = vmatprep.subr.bf16.mxu1 %v874_v20  ;;  %v858_v27 = vpack.c.bf16 %v54_v25, %v53_v24  ;;  %v56_v29 = vld [vmem:[%s1189_s1 + $0x68] sm:$0xff]  ;;  %v57_v31 = vld [vmem:[%s1189_s1 + $0x70] sm:$0xff]  ;;  %v58_v32 = vld [vmem:[%s1189_s1 + $0x78] sm:$0xff] }
  0x11   :  { %853 = vmatpush3.bf16.msra.mxu0 %v850_v12  ;;  %v862_v30 = vpack.c.bf16 %v56_v29, %v55_v28  ;;  %v866_v33 = vpack.c.bf16 %v58_v32, %v57_v31  ;;  %v28_v34 = vld [vmem:[%s1188_s0 + $0x8] sm:$0xff]  ;;  %v29_v35 = vld [vmem:[%s1188_s0 + $0x10] sm:$0xff]  ;;  %v30_v36 = vld [vmem:[%s1188_s0 + $0x18] sm:$0xff] }
  0x12   :  { %855 = vmatprep.subr.bf16.mxu0 %v854_v21  ;;  %v31_v37 = vld [vmem:[%s1188_s0 + $0x20] sm:$0xff]  ;;  %v32_v38 = vld [vmem:[%s1188_s0 + $0x28] sm:$0xff]  ;;  %v33_v39 = vld [vmem:[%s1188_s0 + $0x30] sm:$0xff] }
  0x13   :  { %877 = vmatpush3.bf16.msra.mxu1 %v874_v20  ;;  %v34_v40 = vld [vmem:[%s1188_s0 + $0x38] sm:$0xff]  ;;  %v35_v41 = vld [vmem:[%s1188_s0 + $0x40] sm:$0xff]  ;;  %v36_v42 = vld [vmem:[%s1188_s0 + $0x48] sm:$0xff] }
  0x14   :  { %879 = vmatprep.subr.bf16.mxu1 %v878_v26  ;;  %v37_v43 = vld [vmem:[%s1188_s0 + $0x50] sm:$0xff]  ;;  %v38_v44 = vld [vmem:[%s1188_s0 + $0x58] sm:$0xff]  ;;  %v39_v45 = vld [vmem:[%s1188_s0 + $0x60] sm:$0xff] }
  0x15   :  { %857 = vmatpush3.bf16.msra.mxu0 %v854_v21  ;;  %v40_v46 = vld [vmem:[%s1188_s0 + $0x68] sm:$0xff]  ;;  %v41_v47 = vld [vmem:[%s1188_s0 + $0x70] sm:$0xff]  ;;  %v42_v48 = vld [vmem:[%s1188_s0 + $0x78] sm:$0xff] }
  0x16   :  { %859 = vmatprep.subr.bf16.mxu0 %v858_v27  ;;  %v233_v49 = vld [vmem:[%s1191_s3 + $0x30] sm:$0xff]  ;;  %v234_v50 = vld [vmem:[%s1191_s3 + $0x38] sm:$0xff]  ;;  %v599_v52 = vld [vmem:[%s1190_s2] ss:$0 sm:$0xff] }
  0x17   :  { %881 = vmatpush3.bf16.msra.mxu1 %v878_v26  ;;  %v882_v51 = vpack.c.bf16 %v234_v50, %v233_v49  ;;  %vm1145_vm2 = vmpackc.low %vm242_vm0, %vm242_vm0 }
  0x19   :  { %861 = vmatpush3.bf16.msra.mxu0 %v858_v27  ;;  %883 = vmatprep.subr.bf16.mxu1 %v882_v51 }
  0x1a   :  { %863 = vmatprep.subr.bf16.mxu0 %v862_v30 }
  0x1b   :  { %885 = vmatpush3.bf16.msra.mxu1 %v882_v51 }
  0x1d   :  { %865 = vmatpush3.bf16.msra.mxu0 %v862_v30 }
  0x1e   :  { %867 = vmatprep.subr.bf16.mxu0 %v866_v33 }
  0x21   :  { %869 = vmatpush3.bf16.msra.mxu0 %v866_v33 }
  0x24   :  { %740 = vmatmul.mubr.f32.vlgmr.msra.gmra.mrb[0].mxu0 %v28_v34 }
  0x25   :  { %742 = vmatprep.mubr.f32.mxu0 %v29_v35 }
  0x28   :  { %743 = vmatmul.mubr.f32.gmra.mrb[2].mxu0 %v30_v36 }
  0x29   :  { %745 = vmatprep.mubr.f32.mxu0 %v31_v37  ;;  %v952_v37 = vmov 0.0|0.0  }
  0x2a   :  { %886 = vmatprep.subr.bf16.mxu1 %v952_v37 }
  0x2c   :  { %746 = vmatmul.mubr.f32.gmra.mrb[4].mxu0 %v32_v38  ;;  %v954_v38 = vmov 0.0  }
  0x2d   :  { %748 = vmatprep.mubr.f32.mxu0 %v33_v39  ;;  %v437_v39 = vld [vmem:[%s1194_s6] sm:$0xf] }
  0x30   :  { %749 = vmatmul.mubr.f32.gmra.mrb[6].mxu0 %v34_v40  ;;  %v955_v40 = vmov 0  }
  0x31   :  { %751 = vmatprep.mubr.f32.mxu0 %v35_v41  ;;  %923 = vset.pattern.permute.xlu0 %v955_v40  ;;  %v600_v41 = vld [vmem:[%s1192_s4] ss:$0 sm:$0xff] }
  0x32   :  { %440 = vperm.xlu0 %923, %v437_v39  }
  0x34   :  { %752 = vmatmul.mubr.f32.gmra.mrb[8].mxu0 %v36_v42 }
  0x35   :  { %754 = vmatprep.mubr.f32.mxu0 %v37_v43 }
  0x38   :  { %755 = vmatmul.mubr.f32.gmra.mrb[10].mxu0 %v38_v44 }
  0x39   :  { %757 = vmatprep.mubr.f32.mxu0 %v39_v45 }
  0x3c   :  { %758 = vmatmul.mubr.f32.gmra.mrb[12].mxu0 %v40_v46 }
  0x3d   :  { %760 = vmatprep.mubr.f32.mxu0 %v41_v47 }
  0x40   :  { %761 = vmatmul.mubr.f32.gmra.mrb[14].mxu0 %v42_v48 }
  0xf7   :  { %v741_v53 = vpop.f32.mrb[0].mxu0 }
  0xf8   :  { %v138_v54 = vadd.f32 %v741_v53, %v599_v52  ;;  %v132_v55 = vpop.f32.mrb[1].mxu0 }
  0xf9   :  { %v133_v56 = vadd.f32 %v599_v52, %v132_v55 }
  0xfa   :  { %v212_v59 = vmax.f32 %v138_v54, 0.0 }
  0xfb   :  { %v211_v57 = vmax.f32 %v133_v56, 0.0  ;;  %v744_v58 = vpop.f32.mrb[2].mxu0 }
  0xfc   :  { %v148_v60 = vadd.f32 %v744_v58, %v599_v52  ;;  %v142_v61 = vpop.f32.mrb[3].mxu0 }
  0xfd   :  { %v143_v62 = vadd.f32 %v599_v52, %v142_v61  ;;  %779 = vmatprep.mubr.msk.f32.mxu1 %vm242_vm0, %v211_v57 }
  0xfe   :  { %v214_v63 = vmax.f32 %v148_v60, 0.0  ;;  %780 = vmatmul.mubr.msk.f32.vlgmr.msra.gmra.mrb[0].mxu1 %vm242_vm0, %v212_v59 }
  0xff   :  { %v213_v0 = vmax.f32 %v143_v62, 0.0  ;;  %v747_v1 = vpop.f32.mrb[4].mxu0 }
 0x100   :  { %v158_v2 = vadd.f32 %v747_v1, %v599_v52  ;;  %v152_v3 = vpop.f32.mrb[5].mxu0 }
 0x101   :  { %782 = vmatprep.mubr.msk.f32.mxu1 %vm242_vm0, %v213_v0  ;;  %v153_v4 = vadd.f32 %v599_v52, %v152_v3 }
 0x102   :  { %783 = vmatmul.mubr.msk.f32.gmra.mrb[2].mxu1 %vm242_vm0, %v214_v63  ;;  %v216_v5 = vmax.f32 %v158_v2, 0.0 }
 0x103   :  { %v215_v6 = vmax.f32 %v153_v4, 0.0  ;;  %v750_v7 = vpop.f32.mrb[6].mxu0 }
 0x104   :  { %v168_v8 = vadd.f32 %v750_v7, %v599_v52  ;;  %v162_v9 = vpop.f32.mrb[7].mxu0 }
 0x105   :  { %785 = vmatprep.mubr.msk.f32.mxu1 %vm242_vm0, %v215_v6  ;;  %v163_v10 = vadd.f32 %v599_v52, %v162_v9 }
 0x106   :  { %786 = vmatmul.mubr.msk.f32.gmra.mrb[4].mxu1 %vm242_vm0, %v216_v5  ;;  %v218_v11 = vmax.f32 %v168_v8, 0.0 }
 0x107   :  { %v217_v12 = vmax.f32 %v163_v10, 0.0  ;;  %v753_v13 = vpop.f32.mrb[8].mxu0 }
 0x108   :  { %v178_v14 = vadd.f32 %v753_v13, %v599_v52  ;;  %v172_v15 = vpop.f32.mrb[9].mxu0 }
 0x109   :  { %788 = vmatprep.mubr.msk.f32.mxu1 %vm242_vm0, %v217_v12  ;;  %v173_v16 = vadd.f32 %v599_v52, %v172_v15 }
 0x10a   :  { %789 = vmatmul.mubr.msk.f32.gmra.mrb[6].mxu1 %vm242_vm0, %v218_v11  ;;  %v220_v17 = vmax.f32 %v178_v14, 0.0 }
 0x10b   :  { %v219_v18 = vmax.f32 %v173_v16, 0.0  ;;  %v756_v19 = vpop.f32.mrb[10].mxu0 }
 0x10c   :  { %v188_v20 = vadd.f32 %v756_v19, %v599_v52  ;;  %v182_v21 = vpop.f32.mrb[11].mxu0  ;;  %v436_v19 = vld [vmem:[%s1193_s5] sm:$0xf]  ;;  %s956_s5 = smov [#allocation2]  }
 0x10d   :  { %791 = vmatprep.mubr.msk.f32.mxu1 %vm242_vm0, %v219_v18  ;;  %v183_v22 = vadd.f32 %v599_v52, %v182_v21  ;;  %s591_s13 = sshll.u32 %s956_s5, 4  ;;  %s592_s13 = int_to_ptr.vmem [resolvable:$true] %s591_s13 }
 0x10e   :  { %792 = vmatmul.mubr.msk.f32.gmra.mrb[8].mxu1 %vm242_vm0, %v220_v17  ;;  %v222_v23 = vmax.f32 %v188_v20, 0.0  ;;  %v441_v20 = vpop.permute.xlu0 %440  ;;  %s928_s14 = scalar_lea.vmem %s592_s13, 64  ;;  %p933_p1 = scmp.lt.s32.totalorder %s592_s13, %s592_s13 }
 0x10f   :  { %v221_v24 = vmax.f32 %v183_v22, 0.0  ;;  %v759_v25 = vpop.f32.mrb[12].mxu0  ;;  %p929_p0 = scmp.ne.s32.totalorder %s592_s13, %s928_s14  ;;  %p934_p2 = scmp.lt.s32.totalorder %s928_s14, %s928_s14 }
 0x110   :  { %v198_v26 = vadd.f32 %v759_v25, %v599_v52  ;;  %v192_v27 = vpop.f32.mrb[13].mxu0 }
 0x111   :  { %794 = vmatprep.mubr.msk.f32.mxu1 %vm242_vm0, %v221_v24  ;;  %v193_v28 = vadd.f32 %v599_v52, %v192_v27  ;;  %p935_p3 = por %p934_p2, %p933_p1 }
 0x112   :  { %795 = vmatmul.mubr.msk.f32.gmra.mrb[10].mxu1 %vm242_vm0, %v222_v23  ;;  %v224_v29 = vmax.f32 %v198_v26, 0.0 }
 0x113   :  { %v223_v30 = vmax.f32 %v193_v28, 0.0  ;;  %v762_v31 = vpop.f32.mrb[14].mxu0  ;;  %p936_p4 = pnand %p935_p3, %p929_p0 }
 0x114   :  { %v208_v32 = vadd.f32 %v762_v31, %v599_v52  ;;  %v202_v33 = vpop.f32.mrb[15].mxu0 }
 0x115   :  { %797 = vmatprep.mubr.msk.f32.mxu1 %vm242_vm0, %v223_v30  ;;  %v203_v34 = vadd.f32 %v599_v52, %v202_v33 }
 0x116   :  { %798 = vmatmul.mubr.msk.f32.gmra.mrb[12].mxu1 %vm242_vm0, %v224_v29  ;;  %v226_v35 = vmax.f32 %v208_v32, 0.0 }
 0x117   :  { %v225_v36 = vmax.f32 %v203_v34, 0.0 }
 0x119   :  { %800 = vmatprep.mubr.msk.f32.mxu1 %vm242_vm0, %v225_v36 }
 0x11a   :  { %801 = vmatmul.mubr.msk.f32.gmra.mrb[14].mxu1 %vm242_vm0, %v226_v35 }
 0x11b   :  { %835 = vmatprep.mubr.msk.f32.mxu1 %vm953_vm1, %v954_v38 }
 0x1d1   :  { %v781_v42 = vpop.f32.mrb[0].mxu1 }
 0x1d2   :  { %v363_v43 = vadd.f32 %v781_v42, %v600_v41  ;;  %v357_v44 = vpop.f32.mrb[1].mxu1 }
 0x1d3   :  { %v358_v45 = vadd.f32 %v600_v41, %v357_v44 }
 0x1d5   :  { %v887_v47 = vpack.c.bf16 %v363_v43, %v358_v45  ;;  %v784_v48 = vpop.f32.mrb[2].mxu1 }
 0x1d6   :  { %v373_v49 = vadd.f32 %v784_v48, %v600_v41  ;;  %v367_v50 = vpop.f32.mrb[3].mxu1 }
 0x1d7   :  { %v368_v51 = vadd.f32 %v600_v41, %v367_v50  ;;  %889 = vmatpush3.bf16.xpose.msk.msra.mxu1 %vm1145_vm2, %v887_v47 }
 0x1d8   :  { %890 = vmatprep.subr.bf16.mxu1 %v952_v37 }
 0x1d9   :  { %v891_v52 = vpack.c.bf16 %v373_v49, %v368_v51  ;;  %v787_v53 = vpop.f32.mrb[4].mxu1 }
 0x1da   :  { %v383_v54 = vadd.f32 %v787_v53, %v600_v41  ;;  %v377_v55 = vpop.f32.mrb[5].mxu1 }
 0x1db   :  { %v378_v56 = vadd.f32 %v600_v41, %v377_v55 }
 0x1dd   :  { %v895_v57 = vpack.c.bf16 %v383_v54, %v378_v56  ;;  %v790_v58 = vpop.f32.mrb[6].mxu1 }
 0x1de   :  { %v393_v59 = vadd.f32 %v790_v58, %v600_v41  ;;  %v387_v60 = vpop.f32.mrb[7].mxu1 }
 0x1df   :  { %893 = vmatpush3.bf16.xpose.msk.msra.mxu1 %vm1145_vm2, %v891_v52  ;;  %v388_v61 = vadd.f32 %v600_v41, %v387_v60 }
 0x1e0   :  { %894 = vmatprep.subr.bf16.mxu1 %v952_v37 }
 0x1e1   :  { %v899_v62 = vpack.c.bf16 %v393_v59, %v388_v61  ;;  %v793_v63 = vpop.f32.mrb[8].mxu1 }
 0x1e2   :  { %v403_v0 = vadd.f32 %v793_v63, %v600_v41  ;;  %v397_v1 = vpop.f32.mrb[9].mxu1 }
 0x1e3   :  { %v398_v2 = vadd.f32 %v600_v41, %v397_v1 }
 0x1e5   :  { %v903_v3 = vpack.c.bf16 %v403_v0, %v398_v2  ;;  %v796_v4 = vpop.f32.mrb[10].mxu1 }
 0x1e6   :  { %v413_v5 = vadd.f32 %v796_v4, %v600_v41  ;;  %v407_v6 = vpop.f32.mrb[11].mxu1 }
 0x1e7   :  { %897 = vmatpush3.bf16.xpose.msk.msra.mxu1 %vm1145_vm2, %v895_v57  ;;  %v408_v7 = vadd.f32 %v600_v41, %v407_v6 }
 0x1e8   :  { %898 = vmatprep.subr.bf16.mxu1 %v952_v37 }
 0x1e9   :  { %v907_v8 = vpack.c.bf16 %v413_v5, %v408_v7  ;;  %v799_v9 = vpop.f32.mrb[12].mxu1 }
 0x1ea   :  { %v423_v10 = vadd.f32 %v799_v9, %v600_v41  ;;  %v417_v11 = vpop.f32.mrb[13].mxu1 }
 0x1eb   :  { %v418_v12 = vadd.f32 %v600_v41, %v417_v11 }
 0x1ed   :  { %v911_v13 = vpack.c.bf16 %v423_v10, %v418_v12  ;;  %v802_v14 = vpop.f32.mrb[14].mxu1 }
 0x1ee   :  { %v433_v15 = vadd.f32 %v802_v14, %v600_v41  ;;  %v427_v16 = vpop.f32.mrb[15].mxu1 }
 0x1ef   :  { %901 = vmatpush3.bf16.xpose.msk.msra.mxu1 %vm1145_vm2, %v899_v62  ;;  %v428_v17 = vadd.f32 %v600_v41, %v427_v16 }
 0x1f0   :  { %902 = vmatprep.subr.bf16.mxu1 %v952_v37 }
 0x1f1   :  { %v915_v18 = vpack.c.bf16 %v433_v15, %v428_v17 }
 0x1f7   :  { %905 = vmatpush3.bf16.xpose.msk.msra.mxu1 %vm1145_vm2, %v903_v3 }
 0x1f8   :  { %906 = vmatprep.subr.bf16.mxu1 %v952_v37 }
 0x1ff   :  { %909 = vmatpush3.bf16.xpose.msk.msra.mxu1 %vm1145_vm2, %v907_v8 }
 0x200   :  { %910 = vmatprep.subr.bf16.mxu1 %v952_v37 }
 0x207   :  { %913 = vmatpush3.bf16.xpose.msk.msra.mxu1 %vm1145_vm2, %v911_v13 }
 0x208   :  { %914 = vmatprep.subr.bf16.mxu1 %v952_v37 }
 0x20f   :  { %917 = vmatpush3.bf16.xpose.msk.msra.mxu1 %vm1145_vm2, %v915_v18 }
 0x216   :  { %836 = vmatmul.mubr.msk.f32.vlgmr.msra.gmra.mrb[16].mxu1 %vm242_vm0, %v436_v19 }
 0x2e9   :  { %v560_v21 = vpop.f32.mrb[16].mxu1 }
 0x2ea   :  { %v561_v22 = vadd.f32 %v560_v21, %v441_v20  ;;  %v837_v23 = vpop.f32.mrb[17].mxu1 }
 0x2ec   :  { %v565_v24 = vsel %vm564_vm3, %v561_v22, -inf }
 0x2ed   :  { %v566_v25 = vrot.slane %v565_v24, 4 }
 0x2ef   :  { %v567_v26 = vmax.f32 %v565_v24, %v566_v25 }
 0x2f1   :  { %v568_v27 = vrot.slane %v567_v26, 2 }
 0x2f3   :  { %v569_v28 = vmax.f32 %v567_v26, %v568_v27 }
 0x2f5   :  { %v570_v29 = vrot.slane %v569_v28, 1 }
 0x2f7   :  { %v571_v30 = vmax.f32 %v569_v28, %v570_v29 }
 0x2f9   :  { %v572_v31 = vsub.f32 %v561_v22, %v571_v30 }
 0x2fb   :  { %v573_v32 = vmul.f32 1.442695, %v572_v31 }
 0x2fd   :  { %924 = vpow2.f32 %v573_v32 }
 0x307   :  { %v925_v33 = vpop.eup %924 }
 0x308   :  { %v575_v34 = vsel %vm564_vm3, %v925_v33, 0.0 }
 0x309   :  { %v576_v35 = vrot.slane %v575_v34, 4 }
 0x30b   :  { %v577_v36 = vadd.f32 %v576_v35, %v575_v34 }
 0x30d   :  { %v578_v37 = vrot.slane %v577_v36, 2 }
 0x30f   :  { %v579_v38 = vadd.f32 %v578_v37, %v577_v36 }
 0x311   :  { %v580_v39 = vrot.slane %v579_v38, 1 }
 0x313   :  { %v581_v40 = vadd.f32 %v580_v39, %v579_v38 }
 0x315   :  { %926 = vrcp.f32 %v581_v40 }
 0x31f   :  { %v927_v41 = vpop.eup %926 }
 0x320   :  { %v583_v42 = vmul.f32 %v927_v41, %v925_v33 }
 0x322   :  { %584 = vst [vmem:[#allocation2] sm:$0xf] %v583_v42 }
 0x323   :  { %939 = shalt.err (!%p936_p4)
}
 0x324   :  { %s940_s17 = scalar_lea.hbm %s1195_s7, 64 }
 0x325   :  { %p941_p5 = scmp.ne.s32.totalorder %s1195_s7, %s940_s17  ;;  %p944_p6 = scmp.lt.u32.totalorder %s940_s17, %s1195_s7 }
 0x327   :  { %p946_p7 = pnand %p944_p6, %p941_p5 }
 0x329   :  { %949 = shalt.err (!%p946_p7)
}
 0x32a   :  { %594 = dma.vmem_to_hbm [thread:$0]  %s592_s13, 64, %s1195_s7, [#allocation3]  }
 0x32b   :  { %950 = dma.done.wait [#allocation3], 64  }
 0x32c   :  { %951 = vsyncadd [#allocation3], 4294967232 }
 0x32d   :  { %598 = vsyncpa [#allocation3], 1 }

</bundles_post_ra>
